<compile_context>
chip_gen: v7x
topology: tpu7x:2x2x1
jax: 0.10.0
libtpu: 0.0.40
codegen_flags: <defaults>
</compile_context>

<pallas_src>
import functools

import jax
import jax.numpy as jnp
from jax import lax
from jax.experimental import pallas as pl
from jax.experimental.pallas import tpu as pltpu

_LANE = 128
_SUB = 8
_CHUNK = _LANE * _SUB          # elements per (8, 128) "super-row"


def _plan_tiling(batch, n, itemsize, target_block_bytes=2 * 1024 * 1024):
    """Pick (padded super-rows S, super-rows per grid step st).

    Each grid step moves a (B, st, 8, 128) block (~target_block_bytes), which is
    safely inside the scoped-VMEM default on v5e/v6e/v7x once double-buffered.
    """
    s_raw = -(-n // _CHUNK)                              # ceil(n / 1024)
    bytes_per_srow = batch * _CHUNK * max(int(itemsize), 4)
    st = max(1, target_block_bytes // bytes_per_srow)
    if s_raw <= st:
        return s_raw, s_raw                              # single step, no padding
    s_total = -(-s_raw // st) * st                       # pad S up to multiple of st
    return s_total, st


# ---------------------------------------------------------------------------
# Kernel 1: per-sample min / max.
# Hot loop: VPU-only fold into a resident (B, 8, 128) accumulator.
# Epilogue (last grid step): sublane + lane reduction to (B, 1).
# ---------------------------------------------------------------------------
def _minmax_kernel(x_ref, min_ref, max_ref, min_acc, max_acc):
    k = pl.program_id(0)

    @pl.when(k == 0)
    def _init():
        min_acc[...] = jnp.full(min_acc.shape, jnp.inf, jnp.float32)
        max_acc[...] = jnp.full(max_acc.shape, -jnp.inf, jnp.float32)

    x = x_ref[...].astype(jnp.float32)                   # (B, st, 8, 128)
    min_acc[...] = jnp.minimum(min_acc[...], jnp.min(x, axis=1))
    max_acc[...] = jnp.maximum(max_acc[...], jnp.max(x, axis=1))

    @pl.when(k == pl.num_programs(0) - 1)
    def _finalize():
        mn = jnp.min(min_acc[...], axis=1)               # (B, 128)
        mx = jnp.max(max_acc[...], axis=1)
        min_ref[...] = jnp.min(mn, axis=-1, keepdims=True)   # (B, 1)
        max_ref[...] = jnp.max(mx, axis=-1, keepdims=True)


def _per_sample_minmax(x4, st):
    B, S = x4.shape[0], x4.shape[1]
    grid = (S // st,)
    return pl.pallas_call(
        _minmax_kernel,
        out_shape=(jax.ShapeDtypeStruct((B, 1), jnp.float32),
                   jax.ShapeDtypeStruct((B, 1), jnp.float32)),
        grid_spec=pltpu.PrefetchScalarGridSpec(
            num_scalar_prefetch=0,
            grid=grid,
            in_specs=[pl.BlockSpec((B, st, _SUB, _LANE),
                                   lambda k: (0, k, 0, 0))],
            out_specs=(pl.BlockSpec((B, 1), lambda k: (0, 0)),
                       pl.BlockSpec((B, 1), lambda k: (0, 0))),
            scratch_shapes=[pltpu.VMEM((B, _SUB, _LANE), jnp.float32),
                            pltpu.VMEM((B, _SUB, _LANE), jnp.float32)]),
        compiler_params=pltpu.CompilerParams(
            dimension_semantics=("arbitrary",)),
    )(x4)


# ---------------------------------------------------------------------------
# Kernel 2: elementwise uniform (fake-)quantization.
# Scalar params arrive via scalar prefetch (SMEM); dither is a portable
# counter-based hash (works on real Mosaic and in interpret mode).
# ---------------------------------------------------------------------------
def _uniform_noise(shape, seed_i32, step_i32):
    """U(-0.5, 0.5) dither from a counter-based hash (plain VPU integer ops)."""
    def iota_u32(dim):
        return lax.broadcasted_iota(jnp.int32, shape, dim).astype(jnp.uint32)

    c = (iota_u32(0) * jnp.uint32(0x9E3779B1)
         + iota_u32(1) * jnp.uint32(0x85EBCA77)
         + iota_u32(2) * jnp.uint32(0xC2B2AE3D)
         + iota_u32(3) * jnp.uint32(0x27D4EB2F))
    c = c + seed_i32.astype(jnp.uint32) * jnp.uint32(0x6C8E9CF5)
    c = c + step_i32.astype(jnp.uint32) * jnp.uint32(0xB5297A4D)
    # lowbias32-style avalanche
    c = c ^ (c >> 16)
    c = c * jnp.uint32(0x7FEB352D)
    c = c ^ (c >> 15)
    c = c * jnp.uint32(0x846CA68B)
    c = c ^ (c >> 16)
    # exponent trick: bits -> float in [1.0, 2.0), shift to [-0.5, 0.5)
    bits = (c >> 9) | jnp.uint32(0x3F800000)
    return lax.bitcast_convert_type(bits, jnp.float32) - 1.5


def _quantize_kernel(seed_ref, params_ref, x_ref, o_ref, *, num_bits, stochastic):
    qmax = 2.0 ** num_bits - 1.0
    min_value = params_ref[0]
    scale = params_ref[1]
    inv_scale = params_ref[2]

    x = x_ref[...].astype(jnp.float32)                   # (B, st, 8, 128)
    q = (x - min_value) * inv_scale                      # multiply, not divide

    if stochastic:
        q = q + _uniform_noise(x.shape, seed_ref[0], pl.program_id(0))

    q = jnp.round(jnp.clip(q, 0.0, qmax))                # clamp then round (as ref)
    o_ref[...] = (q * scale + min_value).astype(o_ref.dtype)


def _quantize(x4, st, min_value, scale, inv_scale, *, num_bits, seed, stochastic):
    B, S = x4.shape[0], x4.shape[1]
    grid = (S // st,)
    params = jnp.stack([min_value, scale, inv_scale]).astype(jnp.float32)
    seed_arr = jnp.asarray([seed], dtype=jnp.int32)
    kernel = functools.partial(_quantize_kernel,
                               num_bits=num_bits, stochastic=stochastic)
    return pl.pallas_call(
        kernel,
        out_shape=jax.ShapeDtypeStruct(x4.shape, x4.dtype),
        grid_spec=pltpu.PrefetchScalarGridSpec(
            num_scalar_prefetch=2,
            grid=grid,
            in_specs=[pl.BlockSpec((B, st, _SUB, _LANE),
                                   lambda k, seed, params: (0, k, 0, 0))],
            out_specs=pl.BlockSpec((B, st, _SUB, _LANE),
                                   lambda k, seed, params: (0, k, 0, 0))),
        compiler_params=pltpu.CompilerParams(
            dimension_semantics=("parallel",)),
    )(seed_arr, params, x4)


# ---------------------------------------------------------------------------
# QuantMeasure forward
# ---------------------------------------------------------------------------
def quant_measure_forward(x, running_min, running_max, *, num_bits=8,
                          momentum=0.1, training=True, seed=0,
                          stochastic=True):
    """Returns (quantized_output, new_running_min, new_running_max)."""
    B = x.shape[0]
    N = 1
    for d in x.shape[1:]:
        N *= int(d)

    S, st = _plan_tiling(B, N, jnp.dtype(x.dtype).itemsize)
    n_pad = S * _CHUNK

    x2 = x.reshape(B, N)
    if n_pad != N:
        # Edge-replicate padding keeps per-sample min/max exact; the padded
        # tail of the quantized output is sliced off below.
        x2 = jnp.pad(x2, ((0, 0), (0, n_pad - N)), mode="edge")
    x4 = x2.reshape(B, S, _SUB, _LANE)                   # lane/sublane-dense view

    if training:
        mins, maxs = _per_sample_minmax(x4, st)
        min_value = jnp.mean(mins)
        max_value = jnp.mean(maxs)
        # EMA convention copied from the reference: momentum weights the OLD value.
        new_running_min = running_min * momentum + min_value * (1.0 - momentum)
        new_running_max = running_max * momentum + max_value * (1.0 - momentum)
    else:
        min_value = running_min.reshape(())
        max_value = running_max.reshape(())
        new_running_min = running_min
        new_running_max = running_max

    qmax = 2.0 ** num_bits - 1.0
    scale = jnp.maximum((max_value - min_value) / qmax, jnp.float32(1e-8))
    inv_scale = 1.0 / scale                              # scalar, computed once

    y4 = _quantize(x4, st, min_value, scale, inv_scale,
                   num_bits=num_bits, seed=seed, stochastic=stochastic)
    out = y4.reshape(B, n_pad)[:, :N].reshape(x.shape)
    return out, new_running_min, new_running_max


if __name__ == "__main__":
    key = jax.random.PRNGKey(0)
    # Small NCHW input, consistent with a conv-activation fake-quant module.
    x = jax.random.normal(key, (2, 4, 16, 16), dtype=jnp.float32)

    # Deterministic buffer init (matches register_buffer(torch.zeros(1))).
    running_min = jnp.zeros((1,), jnp.float32)
    running_max = jnp.zeros((1,), jnp.float32)

    out, new_rmin, new_rmax = quant_measure_forward(
        x, running_min, running_max,
        num_bits=8, momentum=0.1, training=True, seed=0, stochastic=True)

    jax.block_until_ready((out, new_rmin, new_rmax))

    assert out.shape == x.shape and out.dtype == x.dtype
    assert new_rmin.shape == running_min.shape
    assert new_rmax.shape == running_max.shape
    print("KERNEL_OK")
</pallas_src>

<mosaic_0001>
module attributes {stable_mosaic.version = 11 : i64} {
  func.func @_minmax_kernel(%arg0: i32, %arg1: memref<2x1x8x128xf32, #tpu.memory_space<vmem>>, %arg2: memref<2x1xf32, #tpu.memory_space<vmem>>, %arg3: memref<2x1xf32, #tpu.memory_space<vmem>>, %arg4: memref<2x8x128xf32, #tpu.memory_space<vmem>>, %arg5: memref<2x8x128xf32, #tpu.memory_space<vmem>>) attributes {dimension_semantics = [#tpu.dimension_semantics<arbitrary>], iteration_bounds = array<i64: 1>, scalar_prefetch = 0 : i64, scratch_operands = 2 : i64, tpu.core_type = #tpu.core_type<tc>, window_params = [{transform_indices = @transform_0, window_bounds = array<i64: 2, 1, 8, 128>}, {pipeline_mode = #tpu.pipeline_mode<synchronous>, transform_indices = @transform_1, window_bounds = array<i64: 2, 1>}, {pipeline_mode = #tpu.pipeline_mode<synchronous>, transform_indices = @transform_2, window_bounds = array<i64: 2, 1>}]} {
    %c0_i32 = arith.constant 0 : i32
    %0 = arith.cmpi eq, %arg0, %c0_i32 : i32
    %1 = arith.extui %0 : i1 to i32
    %c0_i32_0 = arith.constant 0 : i32
    %2 = arith.cmpi ne, %1, %c0_i32_0 : i32
    scf.if %2 {
      %cst_19 = arith.constant 0x7F800000 : f32
      %15 = vector.broadcast %cst_19 : f32 to vector<2x8x128xf32>
      %c0_20 = arith.constant 0 : index
      %c0_21 = arith.constant 0 : index
      %c0_22 = arith.constant 0 : index
      %16 = vector.load %arg4[%c0_20, %c0_21, %c0_22] : memref<2x8x128xf32, #tpu.memory_space<vmem>>, vector<2x8x128xf32>
      tpu.vector_store %arg4[%c0_20, %c0_21, %c0_22], %15 {strides = array<i32>} : memref<2x8x128xf32, #tpu.memory_space<vmem>>, vector<2x8x128xf32>,
      %cst_23 = arith.constant 0xFF800000 : f32
      %17 = vector.broadcast %cst_23 : f32 to vector<2x8x128xf32>
      %c0_24 = arith.constant 0 : index
      %c0_25 = arith.constant 0 : index
      %c0_26 = arith.constant 0 : index
      %18 = vector.load %arg5[%c0_24, %c0_25, %c0_26] : memref<2x8x128xf32, #tpu.memory_space<vmem>>, vector<2x8x128xf32>
      tpu.vector_store %arg5[%c0_24, %c0_25, %c0_26], %17 {strides = array<i32>} : memref<2x8x128xf32, #tpu.memory_space<vmem>>, vector<2x8x128xf32>,
    } else {
    }
    %c0 = arith.constant 0 : index
    %c0_1 = arith.constant 0 : index
    %c0_2 = arith.constant 0 : index
    %c0_3 = arith.constant 0 : index
    %3 = vector.load %arg1[%c0, %c0_1, %c0_2, %c0_3] : memref<2x1x8x128xf32, #tpu.memory_space<vmem>>, vector<2x1x8x128xf32>
    %c0_4 = arith.constant 0 : index
    %c0_5 = arith.constant 0 : index
    %c0_6 = arith.constant 0 : index
    %4 = vector.load %arg4[%c0_4, %c0_5, %c0_6] : memref<2x8x128xf32, #tpu.memory_space<vmem>>, vector<2x8x128xf32>
    %cst = arith.constant dense<0x7F800000> : vector<2x8x128xf32>
    %5 = vector.multi_reduction <minimumf>, %3, %cst [1] : vector<2x1x8x128xf32> to vector<2x8x128xf32>
    %6 = arith.minimumf %4, %5 : vector<2x8x128xf32>
    %c0_7 = arith.constant 0 : index
    %c0_8 = arith.constant 0 : index
    %c0_9 = arith.constant 0 : index
    %7 = vector.load %arg4[%c0_7, %c0_8, %c0_9] : memref<2x8x128xf32, #tpu.memory_space<vmem>>, vector<2x8x128xf32>
    tpu.vector_store %arg4[%c0_7, %c0_8, %c0_9], %6 {strides = array<i32>} : memref<2x8x128xf32, #tpu.memory_space<vmem>>, vector<2x8x128xf32>,
    %c0_10 = arith.constant 0 : index
    %c0_11 = arith.constant 0 : index
    %c0_12 = arith.constant 0 : index
    %8 = vector.load %arg5[%c0_10, %c0_11, %c0_12] : memref<2x8x128xf32, #tpu.memory_space<vmem>>, vector<2x8x128xf32>
    %cst_13 = arith.constant dense<0xFF800000> : vector<2x8x128xf32>
    %9 = vector.multi_reduction <maximumf>, %3, %cst_13 [1] : vector<2x1x8x128xf32> to vector<2x8x128xf32>
    %10 = arith.maximumf %8, %9 : vector<2x8x128xf32>
    %c0_14 = arith.constant 0 : index
    %c0_15 = arith.constant 0 : index
    %c0_16 = arith.constant 0 : index
    %11 = vector.load %arg5[%c0_14, %c0_15, %c0_16] : memref<2x8x128xf32, #tpu.memory_space<vmem>>, vector<2x8x128xf32>
    tpu.vector_store %arg5[%c0_14, %c0_15, %c0_16], %10 {strides = array<i32>} : memref<2x8x128xf32, #tpu.memory_space<vmem>>, vector<2x8x128xf32>,
    %c0_i32_17 = arith.constant 0 : i32
    %12 = arith.cmpi eq, %arg0, %c0_i32_17 : i32
    %13 = arith.extui %12 : i1 to i32
    %c0_i32_18 = arith.constant 0 : i32
    %14 = arith.cmpi ne, %13, %c0_i32_18 : i32
    scf.if %14 {
      %c0_19 = arith.constant 0 : index
      %c0_20 = arith.constant 0 : index
      %c0_21 = arith.constant 0 : index
      %15 = vector.load %arg4[%c0_19, %c0_20, %c0_21] : memref<2x8x128xf32, #tpu.memory_space<vmem>>, vector<2x8x128xf32>
      %cst_22 = arith.constant dense<0x7F800000> : vector<2x128xf32>
      %16 = vector.multi_reduction <minimumf>, %15, %cst_22 [1] : vector<2x8x128xf32> to vector<2x128xf32>
      %c0_23 = arith.constant 0 : index
      %c0_24 = arith.constant 0 : index
      %c0_25 = arith.constant 0 : index
      %17 = vector.load %arg5[%c0_23, %c0_24, %c0_25] : memref<2x8x128xf32, #tpu.memory_space<vmem>>, vector<2x8x128xf32>
      %cst_26 = arith.constant dense<0xFF800000> : vector<2x128xf32>
      %18 = vector.multi_reduction <maximumf>, %17, %cst_26 [1] : vector<2x8x128xf32> to vector<2x128xf32>
      %cst_27 = arith.constant dense<0x7F800000> : vector<2xf32>
      %19 = vector.multi_reduction <minimumf>, %16, %cst_27 [1] : vector<2x128xf32> to vector<2xf32>
      %20 = vector.shape_cast %19 : vector<2xf32> to vector<2x1xf32>
      %c0_28 = arith.constant 0 : index
      %c0_29 = arith.constant 0 : index
      %21 = vector.load %arg2[%c0_28, %c0_29] : memref<2x1xf32, #tpu.memory_space<vmem>>, vector<2x1xf32>
      tpu.vector_store %arg2[%c0_28, %c0_29], %20 {strides = array<i32>} : memref<2x1xf32, #tpu.memory_space<vmem>>, vector<2x1xf32>,
      %cst_30 = arith.constant dense<0xFF800000> : vector<2xf32>
      %22 = vector.multi_reduction <maximumf>, %18, %cst_30 [1] : vector<2x128xf32> to vector<2xf32>
      %23 = vector.shape_cast %22 : vector<2xf32> to vector<2x1xf32>
      %c0_31 = arith.constant 0 : index
      %c0_32 = arith.constant 0 : index
      %24 = vector.load %arg3[%c0_31, %c0_32] : memref<2x1xf32, #tpu.memory_space<vmem>>, vector<2x1xf32>
      tpu.vector_store %arg3[%c0_31, %c0_32], %23 {strides = array<i32>} : memref<2x1xf32, #tpu.memory_space<vmem>>, vector<2x1xf32>,
    } else {
    }
    return
  }
  func.func @transform_0(%arg0: i32) -> (i32, i32, i32, i32) {
    %c0_i32 = arith.constant 0 : i32
    %c0_i32_0 = arith.constant 0 : i32
    %c0_i32_1 = arith.constant 0 : i32
    %c0_i32_2 = arith.constant 0 : i32
    return %c0_i32, %arg0, %c0_i32_0, %c0_i32_1 : i32, i32, i32, i32
  }
  func.func @transform_1(%arg0: i32) -> (i32, i32) {
    %c0_i32 = arith.constant 0 : i32
    %c0_i32_0 = arith.constant 0 : i32
    %c0_i32_1 = arith.constant 0 : i32
    return %c0_i32, %c0_i32_0 : i32, i32
  }
  func.func @transform_2(%arg0: i32) -> (i32, i32) {
    %c0_i32 = arith.constant 0 : i32
    %c0_i32_0 = arith.constant 0 : i32
    %c0_i32_1 = arith.constant 0 : i32
    return %c0_i32, %c0_i32_0 : i32, i32
  }
}

</mosaic_0001>

<bundles_post_ra>
// kernel: tpu_custom_call.1
= control target key start
LH: loop header
LB: loop body
LE: loop exit
PB: predicated region body
PF: predicated region fallthrough
CT: control target
= control target key end

     0   :  { %8 = vsyncpa [#allocation5], 0  ;;  %s132_s9 = smov [#allocation4]   ;;  %s168_s0 = inlined_call_operand.hbm [shape: f32[2,1,8,128], index: 0, kind: input, shape index: {}]   ;;  %s169_s1 = inlined_call_operand.vmem [shape: f32[2,1], index: 1, kind: output, shape index: {0}]   ;;  %s170_s2 = inlined_call_operand.vmem [shape: f32[2,1], index: 2, kind: output, shape index: {1}]  }
   0x1   :  { %s14_s10 = sshll.u32 %s132_s9, 4  ;;  %s108_s13 = scalar_lea.hbm %s168_s0, 256  ;;  %s15_s10 = int_to_ptr.vmem [resolvable:$true] %s14_s10 }
   0x2   :  { %p109_p0 = scmp.ne.s32.totalorder %s168_s0, %s108_s13  ;;  %p112_p1 = scmp.lt.u32.totalorder %s108_s13, %s168_s0 }
   0x4   :  { %p114_p2 = pnand %p112_p1, %p109_p0 }
   0x6   :  { %117 = shalt.err (!%p114_p2)
}
   0x7   :  { %s118_s18 = scalar_lea.vmem %s15_s10, 256  ;;  %p123_p4 = scmp.lt.s32.totalorder %s15_s10, %s15_s10 }
   0x8   :  { %p119_p3 = scmp.ne.s32.totalorder %s15_s10, %s118_s18  ;;  %p124_p5 = scmp.lt.s32.totalorder %s118_s18, %s118_s18 }
   0xa   :  { %p125_p6 = por %p124_p5, %p123_p4 }
   0xc   :  { %p126_p7 = pnand %p125_p6, %p119_p3 }
   0xe   :  { %129 = shalt.err (!%p126_p7)
}
   0xf   :  { %s133_s19 = smov 128   ;;  %s134_s20 = smov 8  }
  0x10   :  { %20 = dma.hbm_to_vmem [thread:$0]  %s168_s0, 256, %s15_s10, [#allocation5], %s133_s19, %s133_s19, %s134_s20  }
  0x11   :  { %130 = dma.done.wait [#allocation5], 256  }
  0x12   :  { %131 = vsyncadd [#allocation5], 4294967040  ;;  %v32_v0 = vld [vmem:[#allocation4] sm:$0xff]  ;;  %v33_v1 = vld [vmem:[#allocation4 + $0x8] sm:$0xff]  ;;  %vm79_vm0 = vcmask 1041409   ;;  %vm82_vm1 = vcmask 1041408  }
  0x13   :  { %v51_v2 = vrot.slane %v32_v0, 4  ;;  %v57_v3 = vrot.slane %v33_v1, 4  ;;  %vm86_vm2 = vcmask 1024  }
  0x15   :  { %v52_v4 = vmin.f32 %v32_v0, %v51_v2  ;;  %v58_v5 = vmin.f32 %v33_v1, %v57_v3  ;;  %v66_v6 = vmax.f32 %v32_v0, %v51_v2  ;;  %v72_v7 = vmax.f32 %v33_v1, %v57_v3 }
  0x17   :  { %v53_v8 = vrot.slane %v52_v4, 2  ;;  %v59_v9 = vrot.slane %v58_v5, 2  ;;  %v67_v10 = vrot.slane %v66_v6, 2  ;;  %v73_v11 = vrot.slane %v72_v7, 2 }
  0x19   :  { %v54_v12 = vmin.f32 %v52_v4, %v53_v8  ;;  %v60_v13 = vmin.f32 %v58_v5, %v59_v9  ;;  %v68_v14 = vmax.f32 %v66_v6, %v67_v10  ;;  %v74_v15 = vmax.f32 %v72_v7, %v73_v11 }
  0x1b   :  { %v55_v16 = vrot.slane %v54_v12, 1  ;;  %v61_v17 = vrot.slane %v60_v13, 1  ;;  %v69_v18 = vrot.slane %v68_v14, 1  ;;  %v75_v19 = vrot.slane %v74_v15, 1 }
  0x1d   :  { %v56_v20 = vmin.f32 %v54_v12, %v55_v16  ;;  %v62_v21 = vmin.f32 %v60_v13, %v61_v17  ;;  %v70_v22 = vmax.f32 %v68_v14, %v69_v18  ;;  %v76_v23 = vmax.f32 %v74_v15, %v75_v19 }
  0x1f   :  { %v80_v24 = vsel %vm79_vm0, %v62_v21, %v56_v20  ;;  %v90_v25 = vsel %vm79_vm0, %v76_v23, %v70_v22 }
  0x20   :  { %v83_v26 = vsel %vm82_vm1, %v80_v24, inf  ;;  %v92_v27 = vsel %vm82_vm1, %v90_v25, -inf }
  0x21   :  { %84 = vmin.xlane.f32.xlu0 %v83_v26 }
  0x25   :  { %93 = vmax.xlane.f32.xlu0 %v92_v27 }
  0xae   :  { %v85_v28 = vpop.xlane.xlu0 %84 }
  0xaf   :  { %87 = vst.msk [vmem:[%s169_s1] sm:$0x3] %vm86_vm2, %v85_v28 }
  0xb2   :  { %v94_v29 = vpop.xlane.xlu0 %93 }
  0xb3   :  { %95 = vst.msk [vmem:[%s170_s2] sm:$0x3] %vm86_vm2, %v94_v29 }
  0xb4   :  { %104 = vsyncpa [#allocation5], 1 }

</bundles_post_ra>
